<compile_context>
chip_gen: v6e
topology: v6e:2x2x1
jax: 0.10.0
libtpu: 0.0.40
codegen_flags: <defaults>
</compile_context>

<pallas_src>
import math

import jax
import jax.numpy as jnp
from jax.experimental import pallas as pl
from jax.experimental.pallas import tpu as pltpu


# ----------------------------------------------------------------------------
# Buffer construction — mirrors PositionalEncoding.__init__ exactly.
# ----------------------------------------------------------------------------
def make_positional_encoding_table(max_len: int, d_model: int) -> jnp.ndarray:
    position = jnp.arange(0, max_len, dtype=jnp.float32)[:, None]            # (max_len, 1)
    div_term = jnp.exp(
        jnp.arange(0, d_model, 2, dtype=jnp.float32) * (-math.log(10000.0) / d_model)
    )                                                                         # (d_model/2,)
    pe = jnp.zeros((max_len, d_model), dtype=jnp.float32)
    pe = pe.at[:, 0::2].set(jnp.sin(position * div_term))
    pe = pe.at[:, 1::2].set(jnp.cos(position * div_term))
    return pe                                                                 # (max_len, d_model)


# ----------------------------------------------------------------------------
# Kernels: pure elementwise add (eval) and add + mask-multiply (train).
# ----------------------------------------------------------------------------
def _add_pe_kernel(x_ref, pe_ref, o_ref):
    # x_ref: (bb, T, C)   pe_ref: (T, C)   -> broadcast over the batch dim.
    o_ref[...] = (x_ref[...] + pe_ref[...][None, :, :]).astype(o_ref.dtype)


def _add_pe_dropout_kernel(x_ref, pe_ref, m_ref, o_ref):
    # m_ref already holds {0, 1/(1-p)} in the compute dtype (inverted dropout).
    y = x_ref[...] + pe_ref[...][None, :, :]
    o_ref[...] = (y * m_ref[...]).astype(o_ref.dtype)


def _pick_tiles(batch: int, total_rows: int, row_bytes: int,
                budget: int = 2 * 1024 * 1024):
    """Pick (batch_block, rows_per_tile) bounded by a per-buffer VMEM budget."""
    # Rows per tile: whole extent if it fits the budget, else a multiple of 8.
    if total_rows <= 8 or total_rows * row_bytes <= budget:
        rows = total_rows
    else:
        rows = max(8, (budget // max(row_bytes, 1)) // 8 * 8)
        rows = min(int(rows), total_rows)
    # Fold batch elements into the block only once the full row extent fits.
    if rows == total_rows:
        bb = max(1, int(budget // max(rows * row_bytes, 1)))
        bb = min(bb, batch)
    else:
        bb = 1
    return bb, rows


# ----------------------------------------------------------------------------
# Wrapper: layout selection, tiling, pallas_call.
# ----------------------------------------------------------------------------
def positional_encoding_forward(
    x: jnp.ndarray,
    pe_table: jnp.ndarray,
    *,
    p: float = 0.1,
    training: bool = False,
    rng_key=None,
) -> jnp.ndarray:
    """Pallas implementation of PositionalEncoding.forward.

    x:        (batch, seq_len, d_model)
    pe_table: (max_len, d_model) with max_len >= seq_len
    """
    B, S, D = x.shape
    max_len, d_model = pe_table.shape
    assert d_model == D and max_len >= S

    compute_dtype = x.dtype
    pe_slice = pe_table[:S, :].astype(compute_dtype)          # (S, D)
    itemsize = jnp.dtype(compute_dtype).itemsize

    # --- dropout mask (host-side RNG; portable) ------------------------------
    mask = None
    if training and p > 0.0:
        if p >= 1.0:                       # torch.nn.Dropout(p=1) zeroes everything
            return jnp.zeros_like(x)
        if rng_key is None:
            rng_key = jax.random.PRNGKey(0)
        keep = jax.random.bernoulli(rng_key, 1.0 - p, shape=x.shape)
        mask = keep.astype(compute_dtype) * jnp.asarray(1.0 / (1.0 - p), compute_dtype)

    # --- layout selection: make the last dim lane-dense when possible --------
    if D % 128 != 0 and (S * D) % 128 == 0:
        # Flatten each (seq, feature) slab onto full 128-lane rows.
        rows_total, cols = (S * D) // 128, 128
        x_k = x.reshape(B, rows_total, cols)
        pe_k = pe_slice.reshape(rows_total, cols)
        mask_k = None if mask is None else mask.reshape(B, rows_total, cols)
    else:
        rows_total, cols = S, D
        x_k, pe_k, mask_k = x, pe_slice, mask

    BB, T = _pick_tiles(B, rows_total, cols * itemsize)
    n_t = pl.cdiv(rows_total, T)
    n_b = pl.cdiv(B, BB)

    row_map = lambda t, b: (b, t, 0)     # noqa: E731
    pe_map = lambda t, b: (t, 0)         # noqa: E731  (constant over inner b loop)

    in_specs = [
        pl.BlockSpec((BB, T, cols), row_map),
        pl.BlockSpec((T, cols), pe_map),
    ]
    args = [x_k, pe_k]
    if mask_k is not None:
        in_specs.append(pl.BlockSpec((BB, T, cols), row_map))
        args.append(mask_k)
        kernel = _add_pe_dropout_kernel
    else:
        kernel = _add_pe_kernel

    # Double-buffered x-like buffers (x [+ mask] + out) plus the shared pe tile.
    n_xlike = len(args)                                        # x (+ mask) + out below
    per_step = (n_xlike * BB * T * cols + T * cols) * itemsize
    vmem_limit = int(min(max(2 * per_step + (4 << 20), 16 << 20), 64 << 20))

    out = pl.pallas_call(
        kernel,
        out_shape=jax.ShapeDtypeStruct(x_k.shape, x.dtype),
        grid_spec=pltpu.PrefetchScalarGridSpec(
            num_scalar_prefetch=0,
            grid=(n_t, n_b),                            # batch innermost: pe tile reused
            in_specs=in_specs,
            out_specs=pl.BlockSpec((BB, T, cols), row_map),
        ),
        compiler_params=pltpu.CompilerParams(
            dimension_semantics=("parallel", "parallel"),
            vmem_limit_bytes=vmem_limit,
        ),
    )(*args)

    return out.reshape(B, S, D)


# ----------------------------------------------------------------------------
# Self-test
# ----------------------------------------------------------------------------
if __name__ == "__main__":
    B, S, D, MAX_LEN = 2, 8, 32, 64
    key = jax.random.PRNGKey(0)
    x = jax.random.normal(key, (B, S, D), dtype=jnp.float32)
    pe_table = make_positional_encoding_table(MAX_LEN, D)
    ref = x + pe_table[:S, :][None, :, :]

    # Eval mode (dropout is identity) — exercises the lane-dense (flattened) path.
    out_eval = jax.block_until_ready(
        positional_encoding_forward(x, pe_table, p=0.1, training=False)
    )
    assert out_eval.shape == (B, S, D)
    assert jnp.allclose(out_eval, ref, atol=1e-6), "eval-mode mismatch vs reference"

    # Training mode — dropout semantics: each element is 0 or (x+pe)/(1-p).
    out_train = jax.block_until_ready(
        positional_encoding_forward(
            x, pe_table, p=0.1, training=True, rng_key=jax.random.PRNGKey(123)
        )
    )
    scaled_ref = ref / (1.0 - 0.1)
    ok = jnp.all(
        jnp.isclose(out_train, 0.0, atol=1e-6)
        | jnp.isclose(out_train, scaled_ref, atol=1e-5)
    )
    assert bool(ok), "training-mode dropout output is not {0, (x+pe)/(1-p)}"

    # 128-aligned d_model — exercises the non-flattened (already lane-dense) path.
    D2 = 128
    x2 = jax.random.normal(jax.random.PRNGKey(2), (B, S, D2), dtype=jnp.float32)
    pe2 = make_positional_encoding_table(MAX_LEN, D2)
    out2 = jax.block_until_ready(
        positional_encoding_forward(x2, pe2, p=0.1, training=False)
    )
    ref2 = x2 + pe2[:S, :][None, :, :]
    assert jnp.allclose(out2, ref2, atol=1e-6), "128-aligned path mismatch vs reference"

    print("KERNEL_OK")
</pallas_src>

<mosaic_0001>
module attributes {stable_mosaic.version = 11 : i64} {
  func.func @_add_pe_kernel(%arg0: i32, %arg1: i32, %arg2: memref<2x2x128xf32, #tpu.memory_space<vmem>>, %arg3: memref<2x128xf32, #tpu.memory_space<vmem>>, %arg4: memref<2x2x128xf32, #tpu.memory_space<vmem>>) attributes {dimension_semantics = [#tpu.dimension_semantics<parallel>, #tpu.dimension_semantics<parallel>], iteration_bounds = array<i64: 1, 1>, scalar_prefetch = 0 : i64, scratch_operands = 0 : i64, tpu.core_type = #tpu.core_type<tc>, window_params = [{transform_indices = @transform_0, window_bounds = array<i64: 2, 2, 128>}, {transform_indices = @transform_1, window_bounds = array<i64: 2, 128>}, {transform_indices = @transform_2, window_bounds = array<i64: 2, 2, 128>}]} {
    %c0 = arith.constant 0 : index
    %c0_0 = arith.constant 0 : index
    %c0_1 = arith.constant 0 : index
    %0 = vector.load %arg2[%c0, %c0_0, %c0_1] : memref<2x2x128xf32, #tpu.memory_space<vmem>>, vector<2x2x128xf32>
    %c0_2 = arith.constant 0 : index
    %c0_3 = arith.constant 0 : index
    %1 = vector.load %arg3[%c0_2, %c0_3] : memref<2x128xf32, #tpu.memory_space<vmem>>, vector<2x128xf32>
    %2 = vector.shape_cast %1 : vector<2x128xf32> to vector<1x2x128xf32>
    %3 = vector.broadcast %2 : vector<1x2x128xf32> to vector<2x2x128xf32>
    %4 = arith.addf %0, %3 : vector<2x2x128xf32>
    %c0_4 = arith.constant 0 : index
    %c0_5 = arith.constant 0 : index
    %c0_6 = arith.constant 0 : index
    %5 = vector.load %arg4[%c0_4, %c0_5, %c0_6] : memref<2x2x128xf32, #tpu.memory_space<vmem>>, vector<2x2x128xf32>
    tpu.vector_store %arg4[%c0_4, %c0_5, %c0_6], %4 {strides = array<i32>} : memref<2x2x128xf32, #tpu.memory_space<vmem>>, vector<2x2x128xf32>,
    return
  }
  func.func @transform_0(%arg0: i32, %arg1: i32) -> (i32, i32, i32) {
    %c0_i32 = arith.constant 0 : i32
    %c0_i32_0 = arith.constant 0 : i32
    return %arg1, %arg0, %c0_i32 : i32, i32, i32
  }
  func.func @transform_1(%arg0: i32, %arg1: i32) -> (i32, i32) {
    %c0_i32 = arith.constant 0 : i32
    %c0_i32_0 = arith.constant 0 : i32
    return %arg0, %c0_i32 : i32, i32
  }
  func.func @transform_2(%arg0: i32, %arg1: i32) -> (i32, i32, i32) {
    %c0_i32 = arith.constant 0 : i32
    %c0_i32_0 = arith.constant 0 : i32
    return %arg1, %arg0, %c0_i32 : i32, i32, i32
  }
}

</mosaic_0001>

<bundles_post_ra>
// kernel: tpu_custom_call.1
= control target key start
LH: loop header
LB: loop body
LE: loop exit
PB: predicated region body
PF: predicated region fallthrough
CT: control target
= control target key end

     0   :  { %7 = vsyncpa [#allocation3], 0  ;;  %s169_s0 = inlined_call_operand.hbm [shape: f32[2,2,128], index: 0, kind: input, shape index: {}]   ;;  %s170_s1 = inlined_call_operand.hbm [shape: f32[2,128], index: 1, kind: input, shape index: {}]   ;;  %s171_s2 = inlined_call_operand.hbm [shape: f32[2,2,128], index: 2, kind: output, shape index: {}]  }
   0x1   :  { %8 = vsyncpa [#allocation6], 0 }
   0x2   :  { %9 = vsyncpa [#allocation4], 0  ;;  %s134_s9 = smov [#allocation2]  }
   0x3   :  { %s15_s10 = sshll.u32 %s134_s9, 4  ;;  %s16_s10 = int_to_ptr.vmem [resolvable:$true] %s15_s10 }
   0x4   :  { %s76_s11 = scalar_lea.vmem %s16_s10, 64  ;;  %p81_p1 = scmp.lt.s32.totalorder %s16_s10, %s16_s10 }
   0x5   :  { %p77_p0 = scmp.ne.s32.totalorder %s16_s10, %s76_s11  ;;  %p82_p2 = scmp.lt.s32.totalorder %s76_s11, %s76_s11 }
   0x7   :  { %p83_p3 = por %p82_p2, %p81_p1 }
   0x9   :  { %p84_p4 = pnand %p83_p3, %p77_p0 }
   0xb   :  { %87 = shalt.err (!%p84_p4)
}
   0xc   :  { %s135_s12 = smov 32   ;;  %s136_s13 = smov 2  }
   0xd   :  { %21 = dma.hbm_to_vmem [thread:$0]  %s169_s0, 64, %s16_s10, [#allocation3], %s135_s12, %s135_s12, %s136_s13  }
   0xe   :  { %s137_s16 = smov [#allocation5]  }
   0xf   :  { %s28_s17 = sshll.u32 %s137_s16, 4  ;;  %s29_s17 = int_to_ptr.vmem [resolvable:$true] %s28_s17 }
  0x10   :  { %s96_s18 = scalar_lea.vmem %s29_s17, 32  ;;  %p101_p6 = scmp.lt.s32.totalorder %s29_s17, %s29_s17 }
  0x11   :  { %p97_p5 = scmp.ne.s32.totalorder %s29_s17, %s96_s18  ;;  %p102_p7 = scmp.lt.s32.totalorder %s96_s18, %s96_s18 }
  0x13   :  { %p103_p8 = por %p102_p7, %p101_p6 }
  0x15   :  { %p104_p9 = pnand %p103_p8, %p97_p5 }
  0x17   :  { %107 = shalt.err (!%p104_p9)
}
  0x18   :  { %31 = dma.hbm_to_vmem [thread:$0]  %s170_s1, 32, %s29_s17, [#allocation6]  }
  0x19   :  { %128 = dma.done.wait [#allocation3], 64  }
  0x1a   :  { %129 = vsyncadd [#allocation3], 4294967232 }
  0x1b   :  { %130 = dma.done.wait [#allocation6], 32  }
  0x1c   :  { %131 = vsyncadd [#allocation6], 4294967264  ;;  %s138_s21 = smov [#allocation7]   ;;  %v38_v0 = vld [vmem:[#allocation2] sm:$0x3] }
  0x1d   :  { %s50_s0 = sshll.u32 %s138_s21, 4  ;;  %v40_v1 = vld [vmem:[#allocation5] sm:$0x3]  ;;  %v39_v2 = vld [vmem:[#allocation2 + $0x2] sm:$0x3]  ;;  %s51_s0 = int_to_ptr.vmem [resolvable:$true] %s50_s0 }
  0x1e   :  { %v41_v3 = vadd.f32 %v40_v1, %v38_v0  ;;  %v42_v4 = vadd.f32 %v40_v1, %v39_v2  ;;  %s108_s22 = scalar_lea.vmem %s51_s0, 64  ;;  %p113_p11 = scmp.lt.s32.totalorder %s51_s0, %s51_s0 }
  0x1f   :  { %p109_p10 = scmp.ne.s32.totalorder %s51_s0, %s108_s22  ;;  %p114_p12 = scmp.lt.s32.totalorder %s108_s22, %s108_s22 }
  0x20   :  { %43 = vst [vmem:[#allocation7] sm:$0x3] %v41_v3  ;;  %44 = vst [vmem:[#allocation7 + $0x2] sm:$0x3] %v42_v4 }
  0x21   :  { %p115_p13 = por %p114_p12, %p113_p11 }
  0x23   :  { %p116_p0 = pnand %p115_p13, %p109_p10 }
  0x25   :  { %119 = shalt.err (!%p116_p0)
}
  0x26   :  { %56 = dma.vmem_to_hbm [thread:$0]  %s51_s0, 64, %s171_s2, [#allocation4], %s135_s12, %s135_s12, %s136_s13  }
  0x27   :  { %132 = dma.done.wait [#allocation4], 64  }
  0x28   :  { %133 = vsyncadd [#allocation4], 4294967232 }
  0x29   :  { %60 = vsyncpa [#allocation3], 1 }
  0x2a   :  { %61 = vsyncpa [#allocation6], 1 }
  0x2b   :  { %62 = vsyncpa [#allocation4], 1 }

</bundles_post_ra>
